<compile_context>
chip_gen: v7x
topology: tpu7x:2x2x1
jax: 0.10.0
libtpu: 0.0.40
codegen_flags: <defaults>
</compile_context>

<pallas_src>
import jax
import jax.numpy as jnp
from jax.experimental import pallas as pl
from jax.experimental.pallas import tpu as pltpu

BN_EPS = 1e-5
LANE = 128


def _round_up(n, m):
    return ((n + m - 1) // m) * m


def _mlp_kernel(x_ref, w1_ref, w2_ref, vec_ref, o_ref):
    x = x_ref[...].astype(jnp.float32)

    vec = vec_ref[...]                    # (8, HP) -- single small load
    g1, be1 = vec[0:1, :], vec[1:2, :]
    g2, be2 = vec[2:3, :], vec[3:4, :]
    w3_row = vec[4:5, :]                  # (1, HP), zeros on pad lanes
    b3 = vec[5:6, 0:1]                    # (1, 1)

    # ---- Layer 1: Linear (bias cancelled by BN) -> BN(batch stats) -> ReLU --
    h = jnp.dot(x, w1_ref[...], preferred_element_type=jnp.float32)
    mean = jnp.mean(h, axis=0, keepdims=True)
    var = jnp.mean(h * h, axis=0, keepdims=True) - mean * mean
    scale = g1 * jax.lax.rsqrt(var + BN_EPS)      # gamma=0 on pad lanes -> 0
    shift = be1 - mean * scale
    h = jnp.maximum(h * scale + shift, 0.0)

    # ---- Layer 2: Linear -> BN(batch stats) -> ReLU -------------------------
    h = jnp.dot(h, w2_ref[...], preferred_element_type=jnp.float32)
    mean = jnp.mean(h, axis=0, keepdims=True)
    var = jnp.mean(h * h, axis=0, keepdims=True) - mean * mean
    scale = g2 * jax.lax.rsqrt(var + BN_EPS)
    shift = be2 - mean * scale
    h = jnp.maximum(h * scale + shift, 0.0)

    # ---- Layer 3: out_dim == 1 -> VPU multiply + lane reduce (skip the MXU) -
    out = jnp.sum(h * w3_row, axis=-1, keepdims=True) + b3
    o_ref[...] = out.astype(o_ref.dtype)


def pack_mlp_params(params):
    """One-time packing/padding of params into 3 lane-dense kernel operands."""
    in_dim, h1 = params["w1"].shape
    h2 = params["w2"].shape[1]
    out_dim = params["w3"].shape[1]
    assert out_dim == 1, "kernel specializes the final layer to out_dim == 1"
    hp = _round_up(max(h1, h2), LANE)

    w1p = jnp.zeros((in_dim, hp), jnp.float32).at[:, :h1].set(params["w1"])
    w2p = jnp.zeros((hp, hp), jnp.float32).at[:h1, :h2].set(params["w2"])

    def row(v):
        v = jnp.asarray(v, jnp.float32).reshape(-1)
        return jnp.pad(v, (0, hp - v.shape[0]))

    zero = jnp.zeros((hp,), jnp.float32)
    vec = jnp.stack([
        row(params["g1"]), row(params["be1"]),   # rows 0,1
        row(params["g2"]), row(params["be2"]),   # rows 2,3
        row(params["w3"][:, 0]),                 # row 4: final weight row
        row(params["b3"]),                       # row 5: b3 at lane 0
        zero, zero,                              # pad to 8 sublanes (1 vreg)
    ])                                            # (8, hp)
    return {"w1p": w1p, "w2p": w2p, "vec": vec}


def mlp_forward(x, packed):
    """x: (B, input_dim) f32; packed: output of pack_mlp_params."""
    B = x.shape[0]
    vmem = pl.BlockSpec(memory_space=pltpu.MemorySpace.VMEM)
    return pl.pallas_call(
        _mlp_kernel,
        out_shape=jax.ShapeDtypeStruct((B, 1), jnp.float32),
        in_specs=[vmem, vmem, vmem, vmem],
        out_specs=vmem,
    )(x, packed["w1p"], packed["w2p"], packed["vec"])


def init_mlp_params(key, input_dim, out_channels=(100, 50, 1)):
    """Synthetic init mimicking PyTorch defaults: Linear U(-1/sqrt(fan_in), ..),
    BatchNorm gamma=1 / beta=0. Linear weights stored pre-transposed (in, out)."""
    params = {}
    prev = input_dim
    for i, out_dim in enumerate(out_channels, start=1):
        key, kw, kb = jax.random.split(key, 3)
        bound = 1.0 / jnp.sqrt(jnp.float32(prev))
        params[f"w{i}"] = jax.random.uniform(kw, (prev, out_dim), jnp.float32, -bound, bound)
        params[f"b{i}"] = jax.random.uniform(kb, (1, out_dim), jnp.float32, -bound, bound)
        if i < len(out_channels):
            params[f"g{i}"] = jnp.ones((1, out_dim), jnp.float32)    # BN weight
            params[f"be{i}"] = jnp.zeros((1, out_dim), jnp.float32)  # BN bias
        prev = out_dim
    return params


def mlp_reference(x, params):
    """Pure-JAX reference of the PyTorch forward (training-mode BN, with biases)."""
    h = x @ params["w1"] + params["b1"]
    m = h.mean(0, keepdims=True)
    v = ((h - m) ** 2).mean(0, keepdims=True)
    h = jnp.maximum((h - m) / jnp.sqrt(v + BN_EPS) * params["g1"] + params["be1"], 0.0)
    h = h @ params["w2"] + params["b2"]
    m = h.mean(0, keepdims=True)
    v = ((h - m) ** 2).mean(0, keepdims=True)
    h = jnp.maximum((h - m) / jnp.sqrt(v + BN_EPS) * params["g2"] + params["be2"], 0.0)
    return h @ params["w3"] + params["b3"]


if __name__ == "__main__":
    key = jax.random.PRNGKey(0)
    kx, kp = jax.random.split(key)

    B, INPUT_DIM = 8, 32
    OUT_CHANNELS = (100, 50, 1)

    x = jax.random.normal(kx, (B, INPUT_DIM), jnp.float32)
    params = init_mlp_params(kp, INPUT_DIM, OUT_CHANNELS)
    packed = pack_mlp_params(params)

    out = mlp_forward(x, packed)
    out = jax.block_until_ready(out)

    ref = mlp_reference(x, params)
    assert out.shape == (B, OUT_CHANNELS[-1])
    assert jnp.allclose(out, ref, atol=1e-4, rtol=1e-4), (out, ref)

    print("KERNEL_OK")
</pallas_src>

<mosaic_0001>
module attributes {stable_mosaic.version = 11 : i64} {
  func.func @_mlp_kernel(%arg0: memref<8x32xf32, #tpu.memory_space<vmem>>, %arg1: memref<32x128xf32, #tpu.memory_space<vmem>>, %arg2: memref<128x128xf32, #tpu.memory_space<vmem>>, %arg3: memref<8x128xf32, #tpu.memory_space<vmem>>, %arg4: memref<8x1xf32, #tpu.memory_space<vmem>>) attributes {dimension_semantics = [], scalar_prefetch = 0 : i64, scratch_operands = 0 : i64, tpu.core_type = #tpu.core_type<tc>} {
    %c0 = arith.constant 0 : index
    %c0_0 = arith.constant 0 : index
    %0 = vector.load %arg0[%c0, %c0_0] : memref<8x32xf32, #tpu.memory_space<vmem>>, vector<8x32xf32>
    %c0_1 = arith.constant 0 : index
    %c0_2 = arith.constant 0 : index
    %1 = vector.load %arg3[%c0_1, %c0_2] : memref<8x128xf32, #tpu.memory_space<vmem>>, vector<8x128xf32>
    %2 = vector.extract_strided_slice %1 {offsets = [0, 0], sizes = [1, 128], strides = [1, 1]} : vector<8x128xf32> to vector<1x128xf32>
    %3 = vector.extract_strided_slice %1 {offsets = [1, 0], sizes = [1, 128], strides = [1, 1]} : vector<8x128xf32> to vector<1x128xf32>
    %4 = vector.extract_strided_slice %1 {offsets = [2, 0], sizes = [1, 128], strides = [1, 1]} : vector<8x128xf32> to vector<1x128xf32>
    %5 = vector.extract_strided_slice %1 {offsets = [3, 0], sizes = [1, 128], strides = [1, 1]} : vector<8x128xf32> to vector<1x128xf32>
    %6 = vector.extract_strided_slice %1 {offsets = [4, 0], sizes = [1, 128], strides = [1, 1]} : vector<8x128xf32> to vector<1x128xf32>
    %7 = vector.extract_strided_slice %1 {offsets = [5, 0], sizes = [1, 1], strides = [1, 1]} : vector<8x128xf32> to vector<1x1xf32>
    %c0_3 = arith.constant 0 : index
    %c0_4 = arith.constant 0 : index
    %8 = vector.load %arg1[%c0_3, %c0_4] : memref<32x128xf32, #tpu.memory_space<vmem>>, vector<32x128xf32>
    %cst = arith.constant dense<0.000000e+00> : vector<8x128xf32>
    %9 = tpu.matmul %0, %8, %cst {dimension_numbers = #tpu.dot_dimension_numbers<[1], [0], [0], [1], [0, 0, 1, 1], [], []>} : vector<8x32xf32>, vector<32x128xf32>, vector<8x128xf32> -> vector<8x128xf32>
    %cst_5 = arith.constant dense<0.000000e+00> : vector<128xf32>
    %10 = vector.multi_reduction <add>, %9, %cst_5 [0] : vector<8x128xf32> to vector<128xf32>
    %11 = vector.shape_cast %10 : vector<128xf32> to vector<1x128xf32>
    %cst_6 = arith.constant 8.000000e+00 : f32
    %12 = vector.broadcast %cst_6 : f32 to vector<1x128xf32>
    %13 = arith.divf %11, %12 : vector<1x128xf32>
    %14 = arith.mulf %9, %9 : vector<8x128xf32>
    %cst_7 = arith.constant dense<0.000000e+00> : vector<128xf32>
    %15 = vector.multi_reduction <add>, %14, %cst_7 [0] : vector<8x128xf32> to vector<128xf32>
    %16 = vector.shape_cast %15 : vector<128xf32> to vector<1x128xf32>
    %cst_8 = arith.constant 8.000000e+00 : f32
    %17 = vector.broadcast %cst_8 : f32 to vector<1x128xf32>
    %18 = arith.divf %16, %17 : vector<1x128xf32>
    %19 = arith.mulf %13, %13 : vector<1x128xf32>
    %20 = arith.subf %18, %19 : vector<1x128xf32>
    %cst_9 = arith.constant 9.99999974E-6 : f32
    %21 = vector.broadcast %cst_9 : f32 to vector<1x128xf32>
    %22 = arith.addf %20, %21 : vector<1x128xf32>
    %23 = math.rsqrt %22 : vector<1x128xf32>
    %24 = arith.mulf %2, %23 : vector<1x128xf32>
    %25 = arith.mulf %13, %24 : vector<1x128xf32>
    %26 = arith.subf %3, %25 : vector<1x128xf32>
    %27 = vector.broadcast %24 : vector<1x128xf32> to vector<8x128xf32>
    %28 = arith.mulf %9, %27 : vector<8x128xf32>
    %29 = vector.broadcast %26 : vector<1x128xf32> to vector<8x128xf32>
    %30 = arith.addf %28, %29 : vector<8x128xf32>
    %cst_10 = arith.constant 0.000000e+00 : f32
    %31 = vector.broadcast %cst_10 : f32 to vector<8x128xf32>
    %32 = arith.maximumf %30, %31 : vector<8x128xf32>
    %c0_11 = arith.constant 0 : index
    %c0_12 = arith.constant 0 : index
    %33 = vector.load %arg2[%c0_11, %c0_12] : memref<128x128xf32, #tpu.memory_space<vmem>>, vector<128x128xf32>
    %cst_13 = arith.constant dense<0.000000e+00> : vector<8x128xf32>
    %34 = tpu.matmul %32, %33, %cst_13 {dimension_numbers = #tpu.dot_dimension_numbers<[1], [0], [0], [1], [0, 0, 1, 1], [], []>} : vector<8x128xf32>, vector<128x128xf32>, vector<8x128xf32> -> vector<8x128xf32>
    %cst_14 = arith.constant dense<0.000000e+00> : vector<128xf32>
    %35 = vector.multi_reduction <add>, %34, %cst_14 [0] : vector<8x128xf32> to vector<128xf32>
    %36 = vector.shape_cast %35 : vector<128xf32> to vector<1x128xf32>
    %cst_15 = arith.constant 8.000000e+00 : f32
    %37 = vector.broadcast %cst_15 : f32 to vector<1x128xf32>
    %38 = arith.divf %36, %37 : vector<1x128xf32>
    %39 = arith.mulf %34, %34 : vector<8x128xf32>
    %cst_16 = arith.constant dense<0.000000e+00> : vector<128xf32>
    %40 = vector.multi_reduction <add>, %39, %cst_16 [0] : vector<8x128xf32> to vector<128xf32>
    %41 = vector.shape_cast %40 : vector<128xf32> to vector<1x128xf32>
    %cst_17 = arith.constant 8.000000e+00 : f32
    %42 = vector.broadcast %cst_17 : f32 to vector<1x128xf32>
    %43 = arith.divf %41, %42 : vector<1x128xf32>
    %44 = arith.mulf %38, %38 : vector<1x128xf32>
    %45 = arith.subf %43, %44 : vector<1x128xf32>
    %cst_18 = arith.constant 9.99999974E-6 : f32
    %46 = vector.broadcast %cst_18 : f32 to vector<1x128xf32>
    %47 = arith.addf %45, %46 : vector<1x128xf32>
    %48 = math.rsqrt %47 : vector<1x128xf32>
    %49 = arith.mulf %4, %48 : vector<1x128xf32>
    %50 = arith.mulf %38, %49 : vector<1x128xf32>
    %51 = arith.subf %5, %50 : vector<1x128xf32>
    %52 = vector.broadcast %49 : vector<1x128xf32> to vector<8x128xf32>
    %53 = arith.mulf %34, %52 : vector<8x128xf32>
    %54 = vector.broadcast %51 : vector<1x128xf32> to vector<8x128xf32>
    %55 = arith.addf %53, %54 : vector<8x128xf32>
    %cst_19 = arith.constant 0.000000e+00 : f32
    %56 = vector.broadcast %cst_19 : f32 to vector<8x128xf32>
    %57 = arith.maximumf %55, %56 : vector<8x128xf32>
    %58 = vector.broadcast %6 : vector<1x128xf32> to vector<8x128xf32>
    %59 = arith.mulf %57, %58 : vector<8x128xf32>
    %cst_20 = arith.constant dense<0.000000e+00> : vector<8xf32>
    %60 = vector.multi_reduction <add>, %59, %cst_20 [1] : vector<8x128xf32> to vector<8xf32>
    %61 = vector.shape_cast %60 : vector<8xf32> to vector<8x1xf32>
    %62 = vector.broadcast %7 : vector<1x1xf32> to vector<8x1xf32>
    %63 = arith.addf %61, %62 : vector<8x1xf32>
    %c0_21 = arith.constant 0 : index
    %c0_22 = arith.constant 0 : index
    %64 = vector.load %arg4[%c0_21, %c0_22] : memref<8x1xf32, #tpu.memory_space<vmem>>, vector<8x1xf32>
    tpu.vector_store %arg4[%c0_21, %c0_22], %63 {strides = array<i32>} : memref<8x1xf32, #tpu.memory_space<vmem>>, vector<8x1xf32>,
    return
  }
}

</mosaic_0001>

<bundles_post_ra>
// kernel: tpu_custom_call.1
= control target key start
LH: loop header
LB: loop body
LE: loop exit
PB: predicated region body
PF: predicated region fallthrough
CT: control target
= control target key end

     0   :  { %9 = vsyncpa [#allocation3], 0  ;;  %s577_s0 = inlined_call_operand.hbm [shape: f32[8,32], index: 0, kind: input, shape index: {}]   ;;  %s578_s1 = inlined_call_operand.hbm [shape: f32[32,128], index: 1, kind: input, shape index: {}]   ;;  %s579_s2 = inlined_call_operand.hbm [shape: f32[128,128], index: 2, kind: input, shape index: {}]   ;;  %s580_s3 = inlined_call_operand.vmem [shape: f32[8,128], index: 3, kind: input, shape index: {}]   ;;  %s581_s4 = inlined_call_operand.vmem [shape: f32[8,1], index: 4, kind: output, shape index: {}]  }
   0x1   :  { %10 = vsyncpa [#allocation5], 0  ;;  %s496_s15 = smov [#allocation4]   ;;  %s426_s19 = scalar_lea.hbm %s578_s1, 512 }
   0x2   :  { %s26_s16 = sshll.u32 %s496_s15, 4  ;;  %p427_p0 = scmp.ne.s32.totalorder %s578_s1, %s426_s19  ;;  %s27_s16 = int_to_ptr.vmem [resolvable:$true] %s26_s16 }
   0x3   :  { %p430_p1 = scmp.lt.u32.totalorder %s426_s19, %s578_s1 }
   0x5   :  { %p432_p2 = pnand %p430_p1, %p427_p0 }
   0x7   :  { %435 = shalt.err (!%p432_p2)
}
   0x8   :  { %s436_s24 = scalar_lea.vmem %s27_s16, 512  ;;  %p441_p4 = scmp.lt.s32.totalorder %s27_s16, %s27_s16 }
   0x9   :  { %p437_p3 = scmp.ne.s32.totalorder %s27_s16, %s436_s24  ;;  %p442_p5 = scmp.lt.s32.totalorder %s436_s24, %s436_s24 }
   0xb   :  { %p443_p6 = por %p442_p5, %p441_p4 }
   0xd   :  { %p444_p7 = pnand %p443_p6, %p437_p3 }
   0xf   :  { %447 = shalt.err (!%p444_p7)
}
  0x10   :  { %s497_s25 = smov 128   ;;  %s498_s26 = smov 8  }
  0x11   :  { %32 = dma.hbm_to_vmem [thread:$0]  %s578_s1, 512, %s27_s16, [#allocation5], %s497_s25, %s497_s25, %s498_s26  }
  0x12   :  { %s499_s29 = smov [#allocation2]   ;;  %s500_s5 = smov [#allocation6]  }
  0x13   :  { %s17_s30 = sshll.u32 %s499_s29, 4  ;;  %s38_s6 = sshll.u32 %s500_s5, 4  ;;  %s18_s30 = int_to_ptr.vmem [resolvable:$true] %s17_s30  ;;  %s39_s6 = int_to_ptr.vmem [resolvable:$true] %s38_s6 }
  0x14   :  { %s448_s9 = scalar_lea.hbm %s577_s0, 128 }
  0x15   :  { %p449_p8 = scmp.ne.s32.totalorder %s577_s0, %s448_s9  ;;  %p452_p9 = scmp.lt.u32.totalorder %s448_s9, %s577_s0 }
  0x17   :  { %p454_p10 = pnand %p452_p9, %p449_p8 }
  0x19   :  { %457 = shalt.err (!%p454_p10)
}
  0x1a   :  { %s458_s1 = scalar_lea.vmem %s18_s30, 128  ;;  %p463_p12 = scmp.lt.s32.totalorder %s18_s30, %s18_s30 }
  0x1b   :  { %p459_p11 = scmp.ne.s32.totalorder %s18_s30, %s458_s1  ;;  %p464_p13 = scmp.lt.s32.totalorder %s458_s1, %s458_s1 }
  0x1d   :  { %p465_p0 = por %p464_p13, %p463_p12 }
  0x1f   :  { %p466_p1 = pnand %p465_p0, %p459_p11 }
  0x21   :  { %469 = shalt.err (!%p466_p1)
}
  0x22   :  { %20 = dma.hbm_to_vmem [thread:$0]  %s577_s0, 128, %s18_s30, [#allocation3]  }
  0x23   :  { %s470_s18 = scalar_lea.hbm %s579_s2, 2048 }
  0x24   :  { %p471_p2 = scmp.ne.s32.totalorder %s579_s2, %s470_s18  ;;  %p474_p3 = scmp.lt.u32.totalorder %s470_s18, %s579_s2 }
  0x26   :  { %p476_p4 = pnand %p474_p3, %p471_p2 }
  0x28   :  { %479 = shalt.err (!%p476_p4)
}
  0x29   :  { %s480_s23 = scalar_lea.vmem %s39_s6, 2048  ;;  %p485_p6 = scmp.lt.s32.totalorder %s39_s6, %s39_s6 }
  0x2a   :  { %p481_p5 = scmp.ne.s32.totalorder %s39_s6, %s480_s23  ;;  %p486_p7 = scmp.lt.s32.totalorder %s480_s23, %s480_s23 }
  0x2c   :  { %p487_p8 = por %p486_p7, %p485_p6 }
  0x2e   :  { %p488_p9 = pnand %p487_p8, %p481_p5 }
  0x30   :  { %491 = shalt.err (!%p488_p9)
}
  0x31   :  { %44 = dma.hbm_to_vmem [thread:$0]  %s579_s2, 2048, %s39_s6, [#allocation5], %s497_s25, %s497_s25, %s498_s26  }
  0x32   :  { %492 = dma.done.wait [#allocation3], 128  }
  0x33   :  { %493 = vsyncadd [#allocation3], 4294967168 }
  0x34   :  { %494 = dma.done.wait [#allocation5], 2560  }
  0x35   :  { %495 = vsyncadd [#allocation5], 4294964736  ;;  %v501_v0 = vmov 0.0|0.0   ;;  %vm502_vm0 = vmmov 0   ;;  %v503_v1 = vmov 0.0   ;;  %v58_v2 = vld [vmem:[#allocation4] sm:$0xff]  ;;  %v162_v53 = vlaneseq }
  0x36   :  { %384 = vmatprep.subr.bf16.mxu0 %v501_v0  ;;  %346 = vmatprep.mubr.msk.f32.mxu0 %vm502_vm0, %v503_v1  ;;  %v59_v3 = vld [vmem:[#allocation4 + $0x8] sm:$0xff]  ;;  %v60_v4 = vld [vmem:[#allocation4 + $0x10] sm:$0xff]  ;;  %v61_v6 = vld [vmem:[#allocation4 + $0x18] sm:$0xff]  ;;  %vm62_vm1 = vcmask 261120   ;;  %vm307_vm2 = vcmask 7168  }
  0x37   :  { %390 = vmatprep.subr.bf16.mxu1 %v501_v0  ;;  %381 = vmatprep.mubr.msk.f32.mxu1 %vm502_vm0, %v503_v1  ;;  %v385_v5 = vpack.c.bf16 %v59_v3, %v58_v2  ;;  %v388_v7 = vpack.c.bf16 %v61_v6, %v60_v4  ;;  %v56_v8 = vld [vmem:[#allocation2] sm:$0xff]  ;;  %v173_v9 = vld [vmem:[#allocation6] sm:$0xff]  ;;  %v174_v10 = vld [vmem:[#allocation6 + $0x8] sm:$0xff]  ;;  %v163_v54 = vshrl.u32 %v162_v53, 7 }
  0x38   :  { %v391_v11 = vpack.c.bf16 %v174_v10, %v173_v9  ;;  %v175_v12 = vld [vmem:[#allocation6 + $0x10] sm:$0xff]  ;;  %v176_v13 = vld [vmem:[#allocation6 + $0x18] sm:$0xff]  ;;  %v177_v15 = vld [vmem:[#allocation6 + $0x20] sm:$0xff] }
  0x39   :  { %386 = vmatpush3.bf16.msra.mxu0 %v385_v5  ;;  %v394_v14 = vpack.c.bf16 %v176_v13, %v175_v12  ;;  %v178_v16 = vld [vmem:[#allocation6 + $0x28] sm:$0xff]  ;;  %v179_v18 = vld [vmem:[#allocation6 + $0x30] sm:$0xff]  ;;  %v180_v19 = vld [vmem:[#allocation6 + $0x38] sm:$0xff]  ;;  %v164_v58 = vsub.s32 0, %v163_v54  ;;  %v169_v62 = vsub.s32 1, %v163_v54 }
  0x3a   :  { %387 = vmatprep.subr.bf16.mxu0 %v501_v0  ;;  %392 = vmatpush3.bf16.msra.mxu1 %v391_v11  ;;  %v397_v17 = vpack.c.bf16 %v178_v16, %v177_v15  ;;  %v400_v20 = vpack.c.bf16 %v180_v19, %v179_v18  ;;  %v181_v21 = vld [vmem:[#allocation6 + $0x40] sm:$0xff]  ;;  %v182_v22 = vld [vmem:[#allocation6 + $0x48] sm:$0xff]  ;;  %v183_v24 = vld [vmem:[#allocation6 + $0x50] sm:$0xff] }
  0x3b   :  { %393 = vmatprep.subr.bf16.mxu1 %v501_v0  ;;  %v403_v23 = vpack.c.bf16 %v182_v22, %v181_v21  ;;  %v184_v25 = vld [vmem:[#allocation6 + $0x58] sm:$0xff]  ;;  %v185_v27 = vld [vmem:[#allocation6 + $0x60] sm:$0xff]  ;;  %v186_v28 = vld [vmem:[#allocation6 + $0x68] sm:$0xff] }
  0x3c   :  { %v406_v26 = vpack.c.bf16 %v184_v25, %v183_v24  ;;  %v187_v29 = vld [vmem:[#allocation6 + $0x70] sm:$0xff]  ;;  %v409_v30 = vpack.c.bf16 %v186_v28, %v185_v27  ;;  %v188_v31 = vld [vmem:[#allocation6 + $0x78] sm:$0xff] }
  0x3d   :  { %389 = vmatpush3.bf16.msra.mxu0 %v388_v7  ;;  %v412_v32 = vpack.c.bf16 %v188_v31, %v187_v29  ;;  %v57_v55 = vld [vmem:[%s580_s3] sm:$0xff] }
  0x3e   :  { %395 = vmatpush3.bf16.msra.mxu1 %v394_v14 }
  0x3f   :  { %396 = vmatprep.subr.bf16.mxu1 %v501_v0 }
  0x40   :  { %347 = vmatmul.mubr.msk.f32.vlgmr.msra.gmra.mrb[0].mxu0 %vm62_vm1, %v56_v8 }
  0x42   :  { %398 = vmatpush3.bf16.msra.mxu1 %v397_v17 }
  0x43   :  { %399 = vmatprep.subr.bf16.mxu1 %v501_v0 }
  0x46   :  { %401 = vmatpush3.bf16.msra.mxu1 %v400_v20 }
  0x47   :  { %402 = vmatprep.subr.bf16.mxu1 %v501_v0 }
  0x4a   :  { %404 = vmatpush3.bf16.msra.mxu1 %v403_v23 }
  0x4b   :  { %405 = vmatprep.subr.bf16.mxu1 %v501_v0 }
  0x4e   :  { %407 = vmatpush3.bf16.msra.mxu1 %v406_v26  ;;  %v286_v26 = vsub.s32 2, %v163_v54 }
  0x4f   :  { %408 = vmatprep.subr.bf16.mxu1 %v501_v0 }
  0x52   :  { %410 = vmatpush3.bf16.msra.mxu1 %v409_v30  ;;  %v291_v30 = vsub.s32 3, %v163_v54 }
  0x53   :  { %411 = vmatprep.subr.bf16.mxu1 %v501_v0 }
  0x56   :  { %413 = vmatpush3.bf16.msra.mxu1 %v412_v32  ;;  %v297_v32 = vsub.s32 4, %v163_v54 }
 0x113   :  { %v132_v33 = vpop.f32.mrb[0].mxu0 }
 0x114   :  { %v136_v34 = vrot.slane %v132_v33, 4  ;;  %v144_v35 = vmul.f32 %v132_v33, %v132_v33  ;;  %v348_v36 = vpop.f32.mrb[1].mxu0 }
 0x115   :  { %v298_v36 = vrot.slane %v57_v55, %v297_v32 }
 0x116   :  { %v137_v37 = vadd.f32 %v136_v34, %v132_v33  ;;  %v145_v38 = vrot.slane %v144_v35, 4 }
 0x118   :  { %v138_v39 = vrot.slane %v137_v37, 2  ;;  %v146_v40 = vadd.f32 %v145_v38, %v144_v35 }
 0x11a   :  { %v139_v41 = vadd.f32 %v138_v39, %v137_v37  ;;  %v147_v42 = vrot.slane %v146_v40, 2  ;;  %v304_v39 = vsub.s32 5, %v163_v54 }
 0x11c   :  { %v140_v43 = vrot.slane %v139_v41, 1  ;;  %v148_v44 = vadd.f32 %v147_v42, %v146_v40  ;;  %v305_v40 = vrot.slane %v57_v55, %v304_v39 }
 0x11e   :  { %v141_v45 = vadd.f32 %v140_v43, %v139_v41  ;;  %v149_v46 = vrot.slane %v148_v44, 1 }
 0x120   :  { %v143_v47 = vmul.f32 0.125, %v141_v45  ;;  %v150_v48 = vadd.f32 %v149_v46, %v148_v44 }
 0x122   :  { %v151_v49 = vmul.f32 0.125, %v150_v48  ;;  %v152_v50 = vmul.f32 %v143_v47, %v143_v47 }
 0x124   :  { %v153_v51 = vsub.f32 %v151_v49, %v152_v50 }
 0x126   :  { %v154_v52 = vadd.f32 1e-05, %v153_v51 }
 0x128   :  { %422 = vrsqrt.f32 %v154_v52 }
 0x132   :  { %v423_v56 = vpop.eup %422 }
 0x133   :  { %v156_v57 = vmul.f32 %v423_v56, %v57_v55 }
 0x135   :  { %v157_v59 = vmul.f32 %v156_v57, %v143_v47  ;;  %v165_v60 = vrot.slane %v156_v57, %v164_v58 }
 0x137   :  { %v159_v61 = vrot.slane %v157_v59, 7  ;;  %v166_v0 = vmul.f32 %v165_v60, %v132_v33 }
 0x139   :  { %v161_v63 = vsub.f32 %v57_v55, %v159_v61 }
 0x13b   :  { %v170_v1 = vrot.slane %v161_v63, %v169_v62 }
 0x13d   :  { %v171_v2 = vadd.f32 %v170_v1, %v166_v0 }
 0x13f   :  { %v172_v3 = vmax.f32 %v171_v2, 0.0 }
 0x141   :  { %382 = vmatmul.mubr.f32.vlgmr.msra.gmra.mrb[0].mxu1 %v172_v3 }
 0x214   :  { %v255_v4 = vpop.f32.mrb[0].mxu1 }
 0x215   :  { %v259_v5 = vrot.slane %v255_v4, 4  ;;  %v266_v6 = vmul.f32 %v255_v4, %v255_v4  ;;  %v383_v7 = vpop.f32.mrb[1].mxu1 }
 0x217   :  { %v260_v8 = vadd.f32 %v259_v5, %v255_v4  ;;  %v267_v9 = vrot.slane %v266_v6, 4 }
 0x219   :  { %v261_v10 = vrot.slane %v260_v8, 2  ;;  %v268_v11 = vadd.f32 %v267_v9, %v266_v6 }
 0x21b   :  { %v262_v12 = vadd.f32 %v261_v10, %v260_v8  ;;  %v269_v13 = vrot.slane %v268_v11, 2 }
 0x21d   :  { %v263_v14 = vrot.slane %v262_v12, 1  ;;  %v270_v15 = vadd.f32 %v269_v13, %v268_v11 }
 0x21f   :  { %v264_v16 = vadd.f32 %v263_v14, %v262_v12  ;;  %v271_v17 = vrot.slane %v270_v15, 1 }
 0x221   :  { %v265_v18 = vmul.f32 0.125, %v264_v16  ;;  %v272_v19 = vadd.f32 %v271_v17, %v270_v15 }
 0x223   :  { %v273_v20 = vmul.f32 0.125, %v272_v19  ;;  %v274_v21 = vmul.f32 %v265_v18, %v265_v18 }
 0x225   :  { %v275_v22 = vsub.f32 %v273_v20, %v274_v21 }
 0x227   :  { %v276_v23 = vadd.f32 1e-05, %v275_v22 }
 0x229   :  { %424 = vrsqrt.f32 %v276_v23 }
 0x233   :  { %v425_v24 = vpop.eup %424 }
 0x234   :  { %v278_v25 = vmul.f32 %v425_v24, %v57_v55 }
 0x236   :  { %v279_v27 = vmul.f32 %v278_v25, %v265_v18  ;;  %v287_v29 = vrot.slane %v278_v25, %v286_v26 }
 0x238   :  { %v281_v28 = vrot.slane %v279_v27, 7  ;;  %v288_v33 = vmul.f32 %v287_v29, %v255_v4 }
 0x23a   :  { %v283_v31 = vsub.f32 %v57_v55, %v281_v28 }
 0x23c   :  { %v292_v34 = vrot.slane %v283_v31, %v291_v30 }
 0x23e   :  { %v293_v35 = vadd.f32 %v292_v34, %v288_v33 }
 0x240   :  { %v294_v37 = vmax.f32 %v293_v35, 0.0 }
 0x242   :  { %v299_v38 = vmul.f32 %v298_v36, %v294_v37 }
 0x244   :  { %300 = vadd.xlane.f32.xlu0 %v299_v38 }
 0x2d1   :  { %v301_v41 = vpop.xlane.xlu0 %300 }
 0x2d2   :  { %v306_v42 = vadd.f32 %v305_v40, %v301_v41 }
 0x2d4   :  { %308 = vst.msk [vmem:[%s581_s4] sm:$0xff] %vm307_vm2, %v306_v42 }
 0x2d5   :  { %313 = vsyncpa [#allocation3], 1 }
 0x2d6   :  { %314 = vsyncpa [#allocation5], 1 }

</bundles_post_ra>
